<compile_context>
chip_gen: v7x
topology: tpu7x:2x2x1
jax: 0.10.0
libtpu: 0.0.40
codegen_flags: <defaults>
</compile_context>

<pallas_src>
import functools

import jax
import jax.numpy as jnp
import numpy as np
from jax.experimental import pallas as pl
from jax.experimental.pallas import tpu as pltpu

LANE = 128
IGNORE_INDEX = -100  # PyTorch CrossEntropyLoss default. The module passes
                     # ignore_index=None (unusable at call time in torch);
                     # default semantics are kept.
_MAX_TILE_P = 131072                 # cap: 128K pixels per tile
_VMEM_BUDGET_BYTES = 8 * 1024 * 1024  # budget for blocks (double-buffered) + scratch


def _choose_tile_p(hw, c, itemsize):
    """Pick a lane-dense pixel tile (multiple of 128, or full extent if hw < 128)."""
    if hw < LANE:
        return int(hw)  # full-extent last-dim block is always legal
    # Per-pixel VMEM bytes: logits (double-buffered) + int32 targets (double-
    # buffered) + two f32 scratch accumulator lanes.
    bytes_per_px = 2 * c * itemsize + 2 * 4 + 2 * 4
    cap = (_VMEM_BUDGET_BYTES // max(1, bytes_per_px)) // LANE * LANE
    cap = int(min(max(cap, LANE), _MAX_TILE_P))
    return int(min(cap, (hw // LANE) * LANE))


def _ce_kernel(logits_ref, target_ref, sum_ref, cnt_ref, acc_sc, cnt_sc, *,
               hw, tile_p, tail_mask):
    """One grid step: batch item (axis 0, parallel) x pixel tile (axis 1, arbitrary)."""
    p = pl.program_id(1)

    @pl.when(p == 0)
    def _init():
        acc_sc[...] = jnp.zeros_like(acc_sc)
        cnt_sc[...] = jnp.zeros_like(cnt_sc)

    x = logits_ref[0].astype(jnp.float32)      # (C, TILE_P): classes on sublanes
    t = target_ref[0]                          # (1, TILE_P) int32

    # log-softmax over the class (sublane) axis
    m = jnp.max(x, axis=0, keepdims=True)                                  # (1, TILE_P)
    lse = jnp.log(jnp.sum(jnp.exp(x - m), axis=0, keepdims=True)) + m      # (1, TILE_P)

    # gather target-class logit via a one-hot compare against a sublane iota
    class_iota = jax.lax.broadcasted_iota(jnp.int32, x.shape, 0)           # (C, TILE_P)
    tgt_logit = jnp.sum(jnp.where(class_iota == t, x, 0.0), axis=0, keepdims=True)

    # validity: not ignore_index; ragged-tail mask only when needed (static branch)
    valid = t != IGNORE_INDEX
    if tail_mask:
        pix = p * tile_p + jax.lax.broadcasted_iota(jnp.int32, t.shape, 1)
        valid = valid & (pix < hw)

    acc_sc[...] += jnp.where(valid, lse - tgt_logit, 0.0)
    cnt_sc[...] += valid.astype(jnp.float32)

    @pl.when(p == pl.num_programs(1) - 1)
    def _finalize():
        lane = jax.lax.broadcasted_iota(jnp.int32, (1, LANE), 1)
        sum_ref[0] = jnp.where(lane == 0, jnp.sum(acc_sc[...]), 0.0)
        cnt_ref[0] = jnp.where(lane == 0, jnp.sum(cnt_sc[...]), 0.0)


def _cross_entropy_pallas(predict_nchw, target_nhw):
    """Mean cross-entropy over valid pixels (ignore_index=-100), NCHW logits."""
    N, C, H, W = predict_nchw.shape
    HW = H * W
    itemsize = jnp.dtype(predict_nchw.dtype).itemsize
    tile_p = _choose_tile_p(HW, C, itemsize)
    n_tiles = pl.cdiv(HW, tile_p)
    tail_mask = (HW % tile_p) != 0

    # Metadata-only reshapes: no transpose, no padded copies, no host dtype cast.
    logits = predict_nchw.reshape(N, C, HW)
    targets = target_nhw.reshape(N, 1, HW).astype(jnp.int32)

    kernel = functools.partial(_ce_kernel, hw=HW, tile_p=tile_p, tail_mask=tail_mask)

    sums, cnts = pl.pallas_call(
        kernel,
        out_shape=(
            jax.ShapeDtypeStruct((N, 1, LANE), jnp.float32),  # per-batch loss sums
            jax.ShapeDtypeStruct((N, 1, LANE), jnp.float32),  # per-batch valid counts
        ),
        grid_spec=pltpu.PrefetchScalarGridSpec(
            num_scalar_prefetch=0,
            grid=(N, n_tiles),
            in_specs=[
                pl.BlockSpec((1, C, tile_p), lambda n, p: (n, 0, p)),
                pl.BlockSpec((1, 1, tile_p), lambda n, p: (n, 0, p)),
            ],
            out_specs=[
                pl.BlockSpec((1, 1, LANE), lambda n, p: (n, 0, 0)),
                pl.BlockSpec((1, 1, LANE), lambda n, p: (n, 0, 0)),
            ],
            scratch_shapes=[
                pltpu.VMEM((1, tile_p), jnp.float32),  # lane-dense loss accumulator
                pltpu.VMEM((1, tile_p), jnp.float32),  # lane-dense valid-count accumulator
            ],
        ),
        compiler_params=pltpu.CompilerParams(
            dimension_semantics=("parallel", "arbitrary"),  # batch axis may split across TCs
            vmem_limit_bytes=32 * 1024 * 1024,
        ),
    )(logits, targets)

    # Tiny wrapper-side reduction + single divide.
    return jnp.sum(sums) / jnp.sum(cnts)


def _forward_percase(predict_nchw, target, num_classes=None):
    # Hard-label branch: target rank == predict rank - 1 (class indices).
    # TODO(synk): soft-target branch (same-rank float targets) and the `mask`
    #             argument of forward_percase are not implemented.
    del num_classes  # derived from predict.shape; any C supported (classes on sublanes)
    return _cross_entropy_pallas(predict_nchw, target)


def ce_for_pixel_contrast(predict, target, num_classes=3):
    """Mirrors CEforPixelContrast.forward: returns (loss, zeros_like(loss))."""
    if isinstance(predict, (list, tuple)):
        w = np.array([1.0 / 2 ** i for i in range(len(predict))], dtype=np.float32)
        w[-1] = 0.0
        w = w / w.sum()
        total = None
        for i in range(len(predict)):
            li = w[i] * _forward_percase(predict[i], target[i], num_classes)
            total = li if total is None else total + li
        return total, jnp.zeros_like(total)
    loss = _forward_percase(predict, target, num_classes)
    return loss, jnp.zeros_like(loss)


def _reference_ce(predict_nchw, target):
    """Pure-JAX reference of torch.nn.CrossEntropyLoss (mean, ignore_index=-100)."""
    N, C, H, W = predict_nchw.shape
    x = jnp.transpose(predict_nchw, (0, 2, 3, 1)).reshape(-1, C).astype(jnp.float32)
    t = target.reshape(-1).astype(jnp.int32)
    lse = jax.scipy.special.logsumexp(x, axis=-1)
    valid = t != IGNORE_INDEX
    t_safe = jnp.where(valid, t, 0)
    tgt = jnp.take_along_axis(x, t_safe[:, None], axis=-1)[:, 0]
    nll = jnp.where(valid, lse - tgt, 0.0)
    return jnp.sum(nll) / jnp.sum(valid.astype(jnp.float32))


if __name__ == "__main__":
    key = jax.random.PRNGKey(0)
    k1, k2 = jax.random.split(key)

    N, C, H, W = 2, 3, 16, 16  # num_classes=3 is the module default
    predict = jax.random.normal(k1, (N, C, H, W), dtype=jnp.float32)
    target = jax.random.randint(k2, (N, H, W), 0, C, dtype=jnp.int32)
    target = target.at[0, 0, :5].set(IGNORE_INDEX)  # exercise the ignore_index path

    loss, aux = ce_for_pixel_contrast(predict, target, num_classes=C)
    loss = jax.block_until_ready(loss)
    aux = jax.block_until_ready(aux)

    ref = jax.block_until_ready(_reference_ce(predict, target))
    assert np.allclose(np.asarray(loss), np.asarray(ref), rtol=1e-5, atol=1e-5), (loss, ref)
    assert float(aux) == 0.0

    print("KERNEL_OK")
</pallas_src>

<mosaic_0001>
module attributes {stable_mosaic.version = 11 : i64} {
  func.func @_ce_kernel(%arg0: i32, %arg1: i32, %arg2: memref<1x3x256xf32, #tpu.memory_space<vmem>>, %arg3: memref<1x1x256xi32, #tpu.memory_space<vmem>>, %arg4: memref<1x1x128xf32, #tpu.memory_space<vmem>>, %arg5: memref<1x1x128xf32, #tpu.memory_space<vmem>>, %arg6: memref<1x256xf32, #tpu.memory_space<vmem>>, %arg7: memref<1x256xf32, #tpu.memory_space<vmem>>) attributes {dimension_semantics = [#tpu.dimension_semantics<parallel>, #tpu.dimension_semantics<arbitrary>], iteration_bounds = array<i64: 2, 1>, scalar_prefetch = 0 : i64, scratch_operands = 2 : i64, tpu.core_type = #tpu.core_type<tc>, window_params = [{transform_indices = @transform_0, window_bounds = array<i64: 1, 3, 256>}, {transform_indices = @transform_1, window_bounds = array<i64: 1, 1, 256>}, {transform_indices = @transform_2, window_bounds = array<i64: 1, 1, 128>}, {transform_indices = @transform_3, window_bounds = array<i64: 1, 1, 128>}]} {
    %c0_i32 = arith.constant 0 : i32
    %0 = arith.cmpi eq, %arg1, %c0_i32 : i32
    %1 = arith.extui %0 : i1 to i32
    %c0_i32_0 = arith.constant 0 : i32
    %2 = arith.cmpi ne, %1, %c0_i32_0 : i32
    scf.if %2 {
      %cst_20 = arith.constant 0.000000e+00 : f32
      %39 = vector.broadcast %cst_20 : f32 to vector<1x256xf32>
      %c0_21 = arith.constant 0 : index
      %c0_22 = arith.constant 0 : index
      %40 = vector.load %arg6[%c0_21, %c0_22] : memref<1x256xf32, #tpu.memory_space<vmem>>, vector<1x256xf32>
      tpu.vector_store %arg6[%c0_21, %c0_22], %39 {strides = array<i32>} : memref<1x256xf32, #tpu.memory_space<vmem>>, vector<1x256xf32>,
      %cst_23 = arith.constant 0.000000e+00 : f32
      %41 = vector.broadcast %cst_23 : f32 to vector<1x256xf32>
      %c0_24 = arith.constant 0 : index
      %c0_25 = arith.constant 0 : index
      %42 = vector.load %arg7[%c0_24, %c0_25] : memref<1x256xf32, #tpu.memory_space<vmem>>, vector<1x256xf32>
      tpu.vector_store %arg7[%c0_24, %c0_25], %41 {strides = array<i32>} : memref<1x256xf32, #tpu.memory_space<vmem>>, vector<1x256xf32>,
    } else {
    }
    %c0 = arith.constant 0 : index
    %c0_1 = arith.constant 0 : index
    %c0_2 = arith.constant 0 : index
    %3 = vector.load %arg2[%c0, %c0_1, %c0_2] : memref<1x3x256xf32, #tpu.memory_space<vmem>>, vector<1x3x256xf32>
    %4 = vector.shape_cast %3 : vector<1x3x256xf32> to vector<3x256xf32>
    %c0_3 = arith.constant 0 : index
    %c0_4 = arith.constant 0 : index
    %c0_5 = arith.constant 0 : index
    %5 = vector.load %arg3[%c0_3, %c0_4, %c0_5] : memref<1x1x256xi32, #tpu.memory_space<vmem>>, vector<1x1x256xi32>
    %6 = vector.shape_cast %5 : vector<1x1x256xi32> to vector<1x256xi32>
    %cst = arith.constant dense<0xFF800000> : vector<256xf32>
    %7 = vector.multi_reduction <maximumf>, %4, %cst [0] : vector<3x256xf32> to vector<256xf32>
    %8 = vector.shape_cast %7 : vector<256xf32> to vector<1x256xf32>
    %9 = vector.broadcast %8 : vector<1x256xf32> to vector<3x256xf32>
    %10 = arith.subf %4, %9 : vector<3x256xf32>
    %11 = math.exp %10 : vector<3x256xf32>
    %cst_6 = arith.constant dense<0.000000e+00> : vector<256xf32>
    %12 = vector.multi_reduction <add>, %11, %cst_6 [0] : vector<3x256xf32> to vector<256xf32>
    %13 = vector.shape_cast %12 : vector<256xf32> to vector<1x256xf32>
    %14 = math.log %13 : vector<1x256xf32>
    %15 = arith.addf %14, %8 : vector<1x256xf32>
    %16 = tpu.iota {dimensions = array<i32: 0>} : vector<3x256xi32>
    %17 = vector.broadcast %6 : vector<1x256xi32> to vector<3x256xi32>
    %18 = arith.cmpi eq, %16, %17 : vector<3x256xi32>
    %cst_7 = arith.constant 0.000000e+00 : f32
    %19 = vector.broadcast %cst_7 : f32 to vector<3x256xf32>
    %20 = arith.select %18, %4, %19 : vector<3x256xi1>, vector<3x256xf32>
    %cst_8 = arith.constant dense<0.000000e+00> : vector<256xf32>
    %21 = vector.multi_reduction <add>, %20, %cst_8 [0] : vector<3x256xf32> to vector<256xf32>
    %22 = vector.shape_cast %21 : vector<256xf32> to vector<1x256xf32>
    %c-100_i32 = arith.constant -100 : i32
    %23 = vector.broadcast %c-100_i32 : i32 to vector<1x256xi32>
    %24 = arith.cmpi ne, %6, %23 : vector<1x256xi32>
    %c0_9 = arith.constant 0 : index
    %c0_10 = arith.constant 0 : index
    %25 = vector.load %arg6[%c0_9, %c0_10] : memref<1x256xf32, #tpu.memory_space<vmem>>, vector<1x256xf32>
    %26 = arith.subf %15, %22 : vector<1x256xf32>
    %cst_11 = arith.constant 0.000000e+00 : f32
    %27 = vector.broadcast %cst_11 : f32 to vector<1x256xf32>
    %28 = arith.select %24, %26, %27 : vector<1x256xi1>, vector<1x256xf32>
    %29 = arith.addf %25, %28 : vector<1x256xf32>
    %c0_12 = arith.constant 0 : index
    %c0_13 = arith.constant 0 : index
    %30 = vector.load %arg6[%c0_12, %c0_13] : memref<1x256xf32, #tpu.memory_space<vmem>>, vector<1x256xf32>
    tpu.vector_store %arg6[%c0_12, %c0_13], %29 {strides = array<i32>} : memref<1x256xf32, #tpu.memory_space<vmem>>, vector<1x256xf32>,
    %c0_14 = arith.constant 0 : index
    %c0_15 = arith.constant 0 : index
    %31 = vector.load %arg7[%c0_14, %c0_15] : memref<1x256xf32, #tpu.memory_space<vmem>>, vector<1x256xf32>
    %32 = arith.extui %24 : vector<1x256xi1> to vector<1x256xi32>
    %33 = arith.sitofp %32 : vector<1x256xi32> to vector<1x256xf32>
    %34 = arith.addf %31, %33 : vector<1x256xf32>
    %c0_16 = arith.constant 0 : index
    %c0_17 = arith.constant 0 : index
    %35 = vector.load %arg7[%c0_16, %c0_17] : memref<1x256xf32, #tpu.memory_space<vmem>>, vector<1x256xf32>
    tpu.vector_store %arg7[%c0_16, %c0_17], %34 {strides = array<i32>} : memref<1x256xf32, #tpu.memory_space<vmem>>, vector<1x256xf32>,
    %c0_i32_18 = arith.constant 0 : i32
    %36 = arith.cmpi eq, %arg1, %c0_i32_18 : i32
    %37 = arith.extui %36 : i1 to i32
    %c0_i32_19 = arith.constant 0 : i32
    %38 = arith.cmpi ne, %37, %c0_i32_19 : i32
    scf.if %38 {
      %39 = tpu.iota {dimensions = array<i32: 1>} : vector<1x128xi32>
      %c0_i32_20 = arith.constant 0 : i32
      %40 = vector.broadcast %c0_i32_20 : i32 to vector<1x128xi32>
      %41 = arith.cmpi eq, %39, %40 : vector<1x128xi32>
      %c0_21 = arith.constant 0 : index
      %c0_22 = arith.constant 0 : index
      %42 = vector.load %arg6[%c0_21, %c0_22] : memref<1x256xf32, #tpu.memory_space<vmem>>, vector<1x256xf32>
      %43 = vector.shape_cast %42 : vector<1x256xf32> to vector<1x1x256xf32>
      %cst_23 = arith.constant dense<0.000000e+00> : vector<1xf32>
      %44 = vector.multi_reduction <add>, %43, %cst_23 [1, 2] : vector<1x1x256xf32> to vector<1xf32>
      %45 = vector.shape_cast %44 : vector<1xf32> to vector<1x1x1xf32>
      %46 = vector.extract %45[0, 0, 0] : f32 from vector<1x1x1xf32>
      %cst_24 = arith.constant 0.000000e+00 : f32
      %47 = vector.broadcast %46 : f32 to vector<1x128xf32>
      %48 = vector.broadcast %cst_24 : f32 to vector<1x128xf32>
      %49 = arith.select %41, %47, %48 : vector<1x128xi1>, vector<1x128xf32>
      %c0_25 = arith.constant 0 : index
      %c0_26 = arith.constant 0 : index
      %c0_27 = arith.constant 0 : index
      %50 = vector.load %arg4[%c0_25, %c0_26, %c0_27] : memref<1x1x128xf32, #tpu.memory_space<vmem>>, vector<1x1x128xf32>
      %51 = vector.shape_cast %50 : vector<1x1x128xf32> to vector<1x128xf32>
      %52 = vector.shape_cast %49 : vector<1x128xf32> to vector<1x1x128xf32>
      tpu.vector_store %arg4[%c0_25, %c0_26, %c0_27], %52 {strides = array<i32>} : memref<1x1x128xf32, #tpu.memory_space<vmem>>, vector<1x1x128xf32>,
      %c0_i32_28 = arith.constant 0 : i32
      %53 = vector.broadcast %c0_i32_28 : i32 to vector<1x128xi32>
      %54 = arith.cmpi eq, %39, %53 : vector<1x128xi32>
      %c0_29 = arith.constant 0 : index
      %c0_30 = arith.constant 0 : index
      %55 = vector.load %arg7[%c0_29, %c0_30] : memref<1x256xf32, #tpu.memory_space<vmem>>, vector<1x256xf32>
      %56 = vector.shape_cast %55 : vector<1x256xf32> to vector<1x1x256xf32>
      %cst_31 = arith.constant dense<0.000000e+00> : vector<1xf32>
      %57 = vector.multi_reduction <add>, %56, %cst_31 [1, 2] : vector<1x1x256xf32> to vector<1xf32>
      %58 = vector.shape_cast %57 : vector<1xf32> to vector<1x1x1xf32>
      %59 = vector.extract %58[0, 0, 0] : f32 from vector<1x1x1xf32>
      %cst_32 = arith.constant 0.000000e+00 : f32
      %60 = vector.broadcast %59 : f32 to vector<1x128xf32>
      %61 = vector.broadcast %cst_32 : f32 to vector<1x128xf32>
      %62 = arith.select %54, %60, %61 : vector<1x128xi1>, vector<1x128xf32>
      %c0_33 = arith.constant 0 : index
      %c0_34 = arith.constant 0 : index
      %c0_35 = arith.constant 0 : index
      %63 = vector.load %arg5[%c0_33, %c0_34, %c0_35] : memref<1x1x128xf32, #tpu.memory_space<vmem>>, vector<1x1x128xf32>
      %64 = vector.shape_cast %63 : vector<1x1x128xf32> to vector<1x128xf32>
      %65 = vector.shape_cast %62 : vector<1x128xf32> to vector<1x1x128xf32>
      tpu.vector_store %arg5[%c0_33, %c0_34, %c0_35], %65 {strides = array<i32>} : memref<1x1x128xf32, #tpu.memory_space<vmem>>, vector<1x1x128xf32>,
    } else {
    }
    return
  }
  func.func @transform_0(%arg0: i32, %arg1: i32) -> (i32, i32, i32) {
    %c0_i32 = arith.constant 0 : i32
    %c0_i32_0 = arith.constant 0 : i32
    return %arg0, %c0_i32, %arg1 : i32, i32, i32
  }
  func.func @transform_1(%arg0: i32, %arg1: i32) -> (i32, i32, i32) {
    %c0_i32 = arith.constant 0 : i32
    %c0_i32_0 = arith.constant 0 : i32
    return %arg0, %c0_i32, %arg1 : i32, i32, i32
  }
  func.func @transform_2(%arg0: i32, %arg1: i32) -> (i32, i32, i32) {
    %c0_i32 = arith.constant 0 : i32
    %c0_i32_0 = arith.constant 0 : i32
    %c0_i32_1 = arith.constant 0 : i32
    return %arg0, %c0_i32, %c0_i32_0 : i32, i32, i32
  }
  func.func @transform_3(%arg0: i32, %arg1: i32) -> (i32, i32, i32) {
    %c0_i32 = arith.constant 0 : i32
    %c0_i32_0 = arith.constant 0 : i32
    %c0_i32_1 = arith.constant 0 : i32
    return %arg0, %c0_i32, %c0_i32_0 : i32, i32, i32
  }
}

</mosaic_0001>

<bundles_post_ra>
// kernel: tpu_custom_call.1
= control target key start
LH: loop header
LB: loop body
LE: loop exit
PB: predicated region body
PF: predicated region fallthrough
CT: control target
= control target key end

     0   :  { %9 = vsyncpa [#allocation5], 0  ;;  %s985_s0 = inlined_call_operand.vmem [shape: f32[2,3,256], index: 0, kind: input, shape index: {}]   ;;  %s986_s1 = inlined_call_operand.vmem [shape: s32[2,1,256], index: 1, kind: input, shape index: {}]   ;;  %s987_s2 = inlined_call_operand.hbm [shape: f32[2,1,128], index: 2, kind: output, shape index: {0}]   ;;  %s988_s3 = inlined_call_operand.hbm [shape: f32[2,1,128], index: 3, kind: output, shape index: {1}]  }
   0x1   :  { %11 = vsyncpa [#allocation5 + $0x1], 0 }
   0x2   :  { %12 = vsyncpa [#allocation7], 0 }
   0x3   :  { %14 = vsyncpa [#allocation7 + $0x1], 0  ;;  %s787_s12 = smov 0   ;;  %s789_s13 = smov 0  }
   0x4   :  { %s791_s14 = smov 0   ;;  %s793_s15 = smov 0  }
   0x5   :  { %s795_s16 = smov 0   ;;  %s797_s17 = smov 0  }
   0x6 LB: > { %s564_s18 = sadd.s32 4294967295, %s761_s17   ;;  %s565_s19 = sadd.s32 4294967294, %s761_s17   ;;  %s761_s17 = sphi %s797_s17, %s20_s17   ;;  %s757_s16 = sphi %s795_s16, %s997_s16   ;;  %s753_s15 = sphi %s793_s15, %s996_s15   ;;  %s749_s14 = sphi %s791_s14, %s995_s14   ;;  %s745_s13 = sphi %s789_s13, %s994_s13   ;;  %s741_s12 = sphi %s787_s12, %s993_s12  }
   0x7   : > { %s32_s20 = sadd.s32 1, %s757_s16  ;;  %s95_s21 = sadd.s32 1, %s749_s14 }
   0x8   : > { %p34_p0 = scmp.ge.s32.totalorder %s32_s20, 2  ;;  %p105_p1 = scmp.ne.s32.totalorder %s749_s14, %s745_s13 }
   0x9   : > { %p106_p2 = scmp.eq.s32.totalorder %s564_s18, 1  ;;  %p111_p3 = scmp.ne.s32.totalorder %s745_s13, %s741_s12 }
   0xa   : > { %s999_s20 = smov (%p34_p0, %s32_s20), 0  ;;  %p112_p5 = scmp.eq.s32.totalorder %s565_s19, 1 }
   0xb   : > { %p827_p4 = por %p106_p2, %p105_p1  ;;  %s92_s23 = ssub.s32 %s757_s16, %s999_s20 }
   0xc   : > { %p568_p6 = scmp.ge.s32.totalorder %s761_s17, 1  ;;  %p93_p7 = scmp.eq.s32.totalorder %s92_s23, 0 }
   0xd   : > { %p834_p8 = por %p112_p5, %p111_p3  ;;  %p181_p9 = scmp.lt.s32.totalorder %s761_s17, 3 }
   0xe   : > { %s840_s25 = scalar_select %p93_p7, %s749_s14, %s95_s21  }
   0xf   : > { %p182_p10 = pnand %p568_p6, %p181_p9 }
  0x10   : > { %p221_p11 = scmp.lt.s32.totalorder (!%p182_p10), %s753_s15, 1  ;;  %v243_v0 = vlaneseq (!%p182_p10)  ;;  %v763_v2 = vmov (!%p182_p10), 0.0   ;;  %vm254_vm1 = vcmask (!%p182_p10), 1042432   ;;  %v764_v61 = vmov (!%p182_p10), 1966171168   ;;  %s890_s8 = sand.u32 (!%p182_p10), 1, %s745_s13  }
  0x11   : > { %185 = sbr.rel (%p182_p10) target bundleno = 364 (0x16c), region = 28  ;;  %v335_v62 = vunpack.c.l.s4 (!%p182_p10), %v764_v61  ;;  %vm379_vm5 = vcmask (!%p182_p10), 1040384   ;;  %s573_s9 = sshll.u32 (!%p182_p10), %s753_s15, 4 }
  0x12   : > { %vm845_vm0 = vcmp.lt.s32.totalorder (!%p182_p10), %v243_v0, 256  ;;  %v300_v24 = vshrl.u32 (!%p182_p10), %v243_v0, 7  ;;  %s213_s10 = scalar_lea.vmem (!%p182_p10), [#allocation4], %s890_s8  ;;  %s219_s19 = scalar_lea.vmem (!%p182_p10), [#allocation6], %s890_s8 }
  0x13   : > { %247 = vst.msk [vmem:[#allocation2] sm:$0x3] (!%p182_p10), %vm845_vm0, %v763_v2  ;;  %248 = vst.msk [vmem:[#allocation3] sm:$0x3] (!%p182_p10), %vm845_vm0, %v763_v2  ;;  %s439_s11 = sshll.u32 (!%p182_p10), %s213_s10, 4  ;;  %s452_s21 = sshll.u32 (!%p182_p10), %s219_s19, 4  ;;  %s904_s11 = int_to_ptr.vmem [resolvable:$true] %s439_s11  ;;  %s913_s21 = int_to_ptr.vmem [resolvable:$true] %s452_s21 }
  0x14   : > { %v869_v27 = vsub.s32 (!%p182_p10), 0, %v300_v24  ;;  %v871_v28 = vsub.s32 (!%p182_p10), 1, %v300_v24  ;;  %s909_s29 = scalar_lea.hbm (!%p182_p10), %s988_s3, %s573_s9  ;;  %s651_s5 = scalar_lea.vmem (!%p182_p10), %s904_s11, 16 }
  0x15   : > { %p652_p12 = scmp.ne.s32.totalorder (!%p182_p10), %s904_s11, %s651_s5  ;;  %s765_s6 = smov (!%p182_p10), [#allocation4]  }
  0x17   : > { %p653_p13 = pnand (!%p182_p10), %p652_p12, %p827_p4 }
  0x18   : > { %s222_s26 = scalar_select %p221_p11, %s753_s15, 1 }
  0x19   : > { %p654_p0 = pneg %p653_p13 }
  0x1a   : > { %s577_s27 = sshll.u32 %s222_s26, 3  ;;  %s571_s28 = sshll.u32 %s222_s26, 1  ;;  %v356_v12 = vld [vmem:[#allocation3] sm:$0x3] }
  0x1b   : > { %s228_s4 = scalar_lea.vmem %s985_s0, %s577_s27  ;;  %s237_s7 = scalar_lea.vmem %s986_s1, %s571_s28 }
  0x1c   : > { %v249_v3 = vld [vmem:[%s228_s4] sm:$0x77]  ;;  %s902_s27 = scalar_lea.hbm %s987_s2, %s573_s9  ;;  %s423_s4 = scalar_lea.sflag [#allocation5], %s890_s8 }
  0x1d   : > { %v252_v4 = vcombine.high %v249_v3, %v249_v3  ;;  %v255_v5 = vsel %vm254_vm1, %v249_v3, -inf  ;;  %v860_v6 = vld [vmem:[%s237_s7] sm:$0x3]  ;;  %s655_s7 = sshll.u32 %s765_s6, 4  ;;  %s656_s7 = int_to_ptr.vmem [resolvable:$false] %s655_s7 }
  0x1e   : > { %v256_v7 = vrot.slane %v255_v5, 4  ;;  %vm327_vm2 = vcmp.ne.s32.totalorder %v860_v6, 4294967196  ;;  %v304_v29 = vrot.slane %v860_v6, %v869_v27  ;;  %v308_v30 = vrot.slane %v860_v6, %v871_v28  ;;  %p658_p1 = scmp.lt.s32.totalorder %s904_s11, %s656_s7 }
  0x1f   : > { %v262_v8 = vsel %vm254_vm1, %v252_v4, -inf  ;;  %v572_v11 = vsel %vm327_vm2, 1.0, %v763_v2 }
  0x20   : > { %v257_v9 = vmax.f32 %v255_v5, %v256_v7  ;;  %v263_v10 = vrot.slane %v262_v8, 4  ;;  %v359_v15 = vadd.f32 %v572_v11, %v356_v12  ;;  %vm309_vm3 = vcmp.eq.s32.totalorder %v300_v24, %v304_v29 }
  0x21   : > { %vm310_vm4 = vcmp.eq.s32.totalorder %v300_v24, %v308_v30  ;;  %v311_v31 = vsel %vm309_vm3, %v249_v3, 0.0 }
  0x22   : > { %v258_v13 = vrot.slane %v257_v9, 2  ;;  %v264_v14 = vmax.f32 %v262_v8, %v263_v10  ;;  %360 = vst.msk [vmem:[#allocation3] sm:$0x3] %vm845_vm0, %v359_v15  ;;  %v312_v35 = vsel %vm310_vm4, %v252_v4, 0.0  ;;  %v313_v37 = vsel %vm254_vm1, %v311_v31, 0.0 }
  0x23   : > { %v320_v41 = vsel %vm254_vm1, %v312_v35, 0.0  ;;  %v314_v42 = vrot.slane %v313_v37, 4 }
  0x24   : > { %v259_v16 = vmax.f32 %v257_v9, %v258_v13  ;;  %v265_v17 = vrot.slane %v264_v14, 2  ;;  %v321_v45 = vrot.slane %v320_v41, 4  ;;  %v336_v9 = vunpack.c.0.s8 %v335_v62 }
  0x25   : > { %v315_v48 = vadd.f32 %v314_v42, %v313_v37 }
  0x26   : > { %v260_v18 = vrot.slane %v259_v16, 1  ;;  %v266_v19 = vmax.f32 %v264_v14, %v265_v17  ;;  %v322_v51 = vadd.f32 %v321_v45, %v320_v41  ;;  %v339_v13 = vsub.s32 %v336_v9, %v300_v24 }
  0x27   : > { %v316_v54 = vrot.slane %v315_v48, 2 }
  0x28   : > { %v261_v20 = vmax.f32 %v259_v16, %v260_v18  ;;  %v267_v21 = vrot.slane %v266_v19, 1  ;;  %v323_v56 = vrot.slane %v322_v51, 2  ;;  %v328_v16 = vld [vmem:[#allocation2] sm:$0x3] }
  0x29   : > { %v317_v57 = vadd.f32 %v316_v54, %v315_v48 }
  0x2a   : > { %v268_v22 = vmax.f32 %v266_v19, %v267_v21  ;;  %v324_v58 = vadd.f32 %v323_v56, %v322_v51  ;;  %v395_v21 = vld [vmem:[#allocation3] sm:$0x3] }
  0x2b   : > { %v318_v59 = vrot.slane %v317_v57, 1 }
  0x2c   : > { %v271_v23 = vcombine.low %v261_v20, %v268_v22  ;;  %v325_v60 = vrot.slane %v324_v58, 1 }
  0x2e   : > { %v273_v25 = vsub.f32 %v249_v3, %v271_v23  ;;  %v319_v3 = vadd.f32 %v318_v59, %v317_v57  ;;  %v326_v8 = vadd.f32 %v325_v60, %v324_v58  ;;  %v404_v23 = vrot.slane %v395_v21, %v871_v28 }
  0x30   : > { %v274_v26 = vmul.f32 1.442695, %v273_v25  ;;  %v408_v6 = vsel %vm379_vm5, %v404_v23, 0.0 }
  0x32   : > { %645 = vpow2.f32 %v274_v26 }
  0x3c   : > { %v646_v32 = vpop.eup %645 }
  0x3d   : > { %v277_v33 = vcombine.high %v646_v32, %v646_v32  ;;  %v279_v34 = vsel %vm254_vm1, %v646_v32, 0.0 }
  0x3e   : > { %v280_v36 = vrot.slane %v279_v34, 4 }
  0x3f   : > { %v286_v38 = vsel %vm254_vm1, %v277_v33, 0.0 }
  0x40   : > { %v281_v39 = vadd.f32 %v280_v36, %v279_v34  ;;  %v287_v40 = vrot.slane %v286_v38, 4 }
  0x42   : > { %v282_v43 = vrot.slane %v281_v39, 2  ;;  %v288_v44 = vadd.f32 %v287_v40, %v286_v38 }
  0x44   : > { %v283_v46 = vadd.f32 %v282_v43, %v281_v39  ;;  %v289_v47 = vrot.slane %v288_v44, 2 }
  0x46   : > { %v284_v49 = vrot.slane %v283_v46, 1  ;;  %v290_v50 = vadd.f32 %v289_v47, %v288_v44  ;;  %v365_v44 = vand.u32 127, %v243_v0 }
  0x48   : > { %v285_v52 = vadd.f32 %v284_v49, %v283_v46  ;;  %v291_v53 = vrot.slane %v290_v50, 1  ;;  %vm366_vm6 = vcmp.eq.s32.totalorder %v365_v44, 0 }
  0x4a   : > { %v292_v55 = vadd.f32 %v291_v53, %v290_v50  ;;  %647 = vlog2.f32 %v285_v52 }
  0x4c   : > { %649 = vlog2.f32 %v292_v55 }
  0x54   : > { %v648_v63 = vpop.eup %647 }
  0x55   : > { %v294_v2 = vmul.f32 0.6931472, %v648_v63 }
  0x56   : > { %v650_v4 = vpop.eup %649 }
  0x57   : > { %v296_v5 = vmul.f32 0.6931472, %v650_v4  ;;  %v297_v7 = vadd.f32 %v294_v2, %v261_v20  ;;  %v400_v20 = vrot.slane %v395_v21, %v869_v27 }
  0x59   : > { %v298_v10 = vadd.f32 %v296_v5, %v268_v22  ;;  %v329_v11 = vsub.f32 %v297_v7, %v319_v3  ;;  %v407_v30 = vsel %vm379_vm5, %v400_v20, 0.0 }
  0x5a   : > { %v409_v32 = vadd.f32 %v408_v6, %v407_v30 }
  0x5b   : > { %v330_v12 = vsub.f32 %v298_v10, %v326_v8 }
  0x5d   : > { %v333_v14 = vcombine.low %v329_v11, %v330_v12 }
  0x5f   : > { %v340_v15 = vrot.slane %v333_v14, %v339_v13 }
  0x61   : > { %v347_v17 = vrot.slane %v340_v15, %v339_v13 }
  0x63   : > { %v349_v18 = vsel %vm327_vm2, %v347_v17, 0.0 }
  0x64   : > { %v350_v19 = vadd.f32 %v349_v18, %v328_v16 }
  0x66   : > { %355 = vst.msk [vmem:[#allocation2] sm:$0x3] %vm845_vm0, %v350_v19 }
  0x6d   : > { %v367_v22 = vld [vmem:[#allocation2] sm:$0x3] }
  0x6e   : > { %v372_v24 = vrot.slane %v367_v22, %v869_v27  ;;  %v376_v25 = vrot.slane %v367_v22, %v871_v28 }
  0x70   : > { %v380_v26 = vsel %vm379_vm5, %v372_v24, 0.0  ;;  %v381_v29 = vsel %vm379_vm5, %v376_v25, 0.0 }
  0x71   : > { %v382_v31 = vadd.f32 %v381_v29, %v380_v26 }
  0x73   : > { %383 = vadd.xlane.f32.xlu0 %v382_v31 }
  0x77   : > { %410 = vadd.xlane.f32.xlu0 %v409_v32 }
 0x100   : > { %v384_v1 = vpop.xlane.xlu0 %383 }
 0x101   : > { %v385_v33 = vrot.slane %v384_v1, 4 }
 0x103   : > { %v386_v34 = vadd.f32 %v385_v33, %v384_v1 }
 0x104   : > { %v411_v35 = vpop.xlane.xlu0 %410 }
 0x105   : > { %v387_v36 = vrot.slane %v386_v34, 2  ;;  %v412_v37 = vrot.slane %v411_v35, 4 }
 0x107   : > { %v413_v38 = vadd.f32 %v412_v37, %v411_v35  ;;  %v388_v27 = vadd.f32 %v387_v36, %v386_v34 }
 0x109   : > { %v414_v39 = vrot.slane %v413_v38, 2  ;;  %v389_v28 = vrot.slane %v388_v27, 1 }
 0x10b   : > { %v415_v40 = vadd.f32 %v414_v39, %v413_v38  ;;  %v390_v41 = vadd.f32 %v389_v28, %v388_v27 }
 0x10d   : > { %578 = vpush %v390_v41  ;;  %v416_v42 = vrot.slane %v415_v40, 1 }
 0x10f   : > { %v417_v43 = vadd.f32 %v416_v42, %v415_v40 }
 0x111   : > { %580 = vpush %v417_v43 }
 0x13e   : > { %s579_s18 = spop %578 }
 0x13f   : > { %v392_v45 = vstv %s579_s18 }
 0x140   : > { %v393_v46 = vsel %vm366_vm6, %v392_v45, 0.0 }
 0x141   : > { %394 = vst [vmem:[%s213_s10] sm:$0x1] %v393_v46  ;;  %s657_s10 = scalar_lea.vmem %s656_s7, 32 }
 0x142   : > { %s911_s30 = spop %580  ;;  %p659_p2 = scmp.lt.s32.totalorder %s657_s10, %s651_s5 }
 0x143   : > { %v419_v0 = vstv %s911_s30 }
 0x144   : > { %p660_p3 = por %p659_p2, %p658_p1 }
 0x146   : > { %p661_p5 = pnand %p660_p3, %p654_p0 }
 0x148   : > { %664 = shalt.err (!%p661_p5)
}
 0x149   : > { %s665_s9 = scalar_lea.hbm %s902_s27, 16  ;;  %s669_s26 = scalar_lea.hbm %s987_s2, 32 }
 0x14a   : > { %p666_p6 = scmp.ne.s32.totalorder %s902_s27, %s665_s9  ;;  %p670_p10 = scmp.lt.u32.totalorder %s902_s27, %s987_s2 }
 0x14b   : > { %p671_p11 = scmp.lt.u32.totalorder %s669_s26, %s665_s9  ;;  %p673_p13 = scmp.lt.u32.totalorder %s665_s9, %s902_s27 }
 0x14c   : > { %p667_p7 = pnand %p666_p6, %p827_p4 }
 0x14d   : > { %p672_p12 = por %p671_p11, %p670_p10 }
 0x14e   : > { %p668_p9 = pneg %p667_p7 }
 0x14f   : > { %p674_p0 = por %p673_p13, %p672_p12 }
 0x151   : > { %p675_p1 = pnand %p674_p0, %p668_p9 }
 0x153   : > { %678 = shalt.err (!%p675_p1)
}
 0x154   : > { %582 = dma.vmem_to_hbm [thread:$0]  (%p827_p4), %s904_s11, 16, %s902_s27, %s423_s4   ;;  %v420_v47 = vsel %vm366_vm6, %v419_v0, 0.0 }
 0x155   : > { %421 = vst [vmem:[%s219_s19] sm:$0x1] %v420_v47  ;;  %s427_s30 = scalar_lea.sflag [#allocation7], %s890_s8  ;;  %s679_s5 = scalar_lea.vmem %s913_s21, 16 }
 0x156   : > { %p680_p2 = scmp.ne.s32.totalorder %s913_s21, %s679_s5  ;;  %s766_s6 = smov [#allocation6]  }
 0x157   : > { %s683_s7 = sshll.u32 %s766_s6, 4  ;;  %s684_s7 = int_to_ptr.vmem [resolvable:$false] %s683_s7 }
 0x158   : > { %p681_p3 = pnand %p680_p2, %p827_p4  ;;  %s685_s10 = scalar_lea.vmem %s684_s7, 32 }
 0x159   : > { %p686_p6 = scmp.lt.s32.totalorder %s913_s21, %s684_s7  ;;  %p687_p7 = scmp.lt.s32.totalorder %s685_s10, %s679_s5 }
 0x15a   : > { %p682_p5 = pneg %p681_p3 }
 0x15b   : > { %p688_p9 = por %p687_p7, %p686_p6 }
 0x15d   : > { %p689_p10 = pnand %p688_p9, %p682_p5 }
 0x15f   : > { %692 = shalt.err (!%p689_p10)
}
 0x160   : > { %s693_s8 = scalar_lea.hbm %s909_s29, 16  ;;  %s697_s27 = scalar_lea.hbm %s988_s3, 32 }
 0x161   : > { %p694_p11 = scmp.ne.s32.totalorder %s909_s29, %s693_s8  ;;  %p698_p0 = scmp.lt.u32.totalorder %s909_s29, %s988_s3 }
 0x162   : > { %p699_p1 = scmp.lt.u32.totalorder %s697_s27, %s693_s8  ;;  %p701_p3 = scmp.lt.u32.totalorder %s693_s8, %s909_s29 }
 0x163   : > { %p695_p12 = pnand %p694_p11, %p827_p4 }
 0x164   : > { %p700_p2 = por %p699_p1, %p698_p0 }
 0x165   : > { %p696_p13 = pneg %p695_p12 }
 0x166   : > { %p702_p5 = por %p701_p3, %p700_p2 }
 0x168   : > { %p703_p6 = pnand %p702_p5, %p696_p13 }
 0x16a   : > { %706 = shalt.err (!%p703_p6)
}
 0x16b   : > { %583 = dma.vmem_to_hbm [thread:$0]  (%p827_p4), %s913_s21, 16, %s909_s29, %s427_s30  }
 0x16c PF: > { %p593_p7 = scmp.ge.s32.totalorder %s761_s17, 2  ;;  %s464_s18 = sand.u32 1, %s741_s12  }
 0x16d   : > { %s465_s23 = scalar_lea.sflag [#allocation5], %s464_s18 }
 0x16e   : > { %p587_p9 = pnand %p593_p7, %p834_p8 }
 0x170   : > { %732 = dma.done.wait (!%p587_p9), %s465_s23, 16  }
 0x171   : > { %734 = vsyncadd (!%p587_p9), %s465_s23, 4294967280  ;;  %s473_s26 = scalar_lea.sflag [#allocation7], %s464_s18 }
 0x172   : > { %736 = dma.done.wait (!%p587_p9), %s473_s26, 16  }
 0x173   : > { %738 = vsyncadd (!%p587_p9), %s473_s26, 4294967280  ;;  %s20_s17 = sadd.s32 1, %s761_s17   ;;  %s993_s12 = smov %s745_s13 }
 0x174   : > { %p17_p10 = scmp.ge.s32.totalorder %s20_s17, 4   ;;  %s994_s13 = smov %s749_s14 }
 0x175   : > { %s995_s14 = smov %s840_s25  ;;  %s996_s15 = smov %s757_s16 }
 0x176   : > { %s997_s16 = smov %s999_s20  ;;  %19 = sbr.rel (!%p17_p10) target bundleno = 6 (0x6), region = 91 }
 0x17d   :  { %477 = vsyncpa [#allocation5], 1 }
 0x17e   :  { %479 = vsyncpa [#allocation5 + $0x1], 1 }
 0x17f   :  { %480 = vsyncpa [#allocation7], 1 }
 0x180   :  { %482 = vsyncpa [#allocation7 + $0x1], 1 }

</bundles_post_ra>
